<compile_context>
chip_gen: v7x
topology: tpu7x:2x2x1
jax: 0.10.0
libtpu: 0.0.40
codegen_flags: <defaults>
</compile_context>

<pallas_src>
import jax
import jax.numpy as jnp
from jax.experimental import pallas as pl
from jax.experimental.pallas import tpu as pltpu


# --------------------------------------------------------------------------- #
# Pallas kernel: masked max-pooling over the view axis (one batch row / step)
# --------------------------------------------------------------------------- #
def _mvcnn_view_pool_kernel(pos_ref, avg_ref, wxh_ref, avg_out_ref, wxh_out_ref):
    """pos_ref:     (1, V, 1) int32   -- view ids; -1 marks an absent view
    avg_ref:     (1, V, F) float32 -- pooled backbone features per view
    wxh_ref:     (1, V, D) float32 -- flattened spatial features per view
    avg_out_ref: (1, 1, F) float32 -- max over views after clamping absent views to -1
    wxh_out_ref: (1, 1, D) float32
    """
    msk = pos_ref[...] == -1  # (1, V, 1) bool; lane-broadcast across D/F in the selects
    avg_out_ref[...] = jnp.max(
        jnp.where(msk, -1.0, avg_ref[...]), axis=1, keepdims=True
    )
    wxh_out_ref[...] = jnp.max(
        jnp.where(msk, -1.0, wxh_ref[...]), axis=1, keepdims=True
    )


def mvcnn_view_pool(avg, wxh, pos):
    """avg: (B, V, F); wxh: (B, V, Cf, Wf, Hf); pos: (B, V).

    Returns (avg_features (B, F), wxh_features (B, Cf, Wf, Hf)) exactly like
    the tail of MVCNN.forward (mask absent views to -1, max over views).
    """
    B, V, F = avg.shape
    Cf, Wf, Hf = wxh.shape[-3:]
    D = Cf * Wf * Hf

    wxh_flat = wxh.reshape(B, V, D)              # free relayout (row-major)
    pos3 = pos.reshape(B, V, 1).astype(jnp.int32)

    avg_out, wxh_out = pl.pallas_call(
        _mvcnn_view_pool_kernel,
        out_shape=(
            jax.ShapeDtypeStruct((B, 1, F), avg.dtype),
            jax.ShapeDtypeStruct((B, 1, D), wxh_flat.dtype),
        ),
        grid=(B,),
        in_specs=[
            pl.BlockSpec((1, V, 1), lambda b: (b, 0, 0)),   # pos
            pl.BlockSpec((1, V, F), lambda b: (b, 0, 0)),   # avg features
            pl.BlockSpec((1, V, D), lambda b: (b, 0, 0)),   # wxh features (flattened)
        ],
        out_specs=(
            pl.BlockSpec((1, 1, F), lambda b: (b, 0, 0)),
            pl.BlockSpec((1, 1, D), lambda b: (b, 0, 0)),
        ),
        compiler_params=pltpu.CompilerParams(
            dimension_semantics=("parallel",),              # shards B across TCs on v7x
        ),
    )(pos3, avg, wxh_flat)

    avg_features = avg_out.reshape(B, F)
    wxh_features = wxh_out.reshape(B, Cf, Wf, Hf)
    return avg_features, wxh_features


# --------------------------------------------------------------------------- #
# Stand-in backbone (pure JAX, outside the kernel) + full MVCNN forward
# --------------------------------------------------------------------------- #
def toy_backbone(img_flat, params):
    """Deterministic stand-in for `self.model`.

    img_flat: (N, C, W, H) -> (avg: (N, F), wxh: (N, C, W//2, H//2))
    """
    N, C, W, H = img_flat.shape
    # Spatial features: 2x2 average pool + per-channel affine + relu.
    pooled = img_flat.reshape(N, C, W // 2, 2, H // 2, 2).mean(axis=(3, 5))
    wxh = jax.nn.relu(
        pooled * params["gamma"][None, :, None, None]
        + params["beta"][None, :, None, None]
    )
    # Pooled features: global average pool + linear + tanh.
    gap = img_flat.mean(axis=(2, 3))                             # (N, C)
    avg = jnp.tanh(gap @ params["w_fc"] + params["b_fc"])        # (N, F)
    return avg, wxh


@jax.jit
def mvcnn_forward(img, pos, backbone_params):
    """Mirrors MVCNN.forward((img, pos))."""
    B, V, C, W, H = img.shape
    img_flat = img.reshape(B * V, C, W, H)
    avg, wxh = toy_backbone(img_flat, backbone_params)
    F = avg.shape[-1]
    Cf, Wf, Hf = wxh.shape[-3:]
    avg = avg.reshape(B, V, F)
    wxh = wxh.reshape(B, V, Cf, Wf, Hf)
    return mvcnn_view_pool(avg, wxh, pos)


def _reference(img, pos, backbone_params):
    """Pure-JAX reference mirroring the PyTorch forward line by line."""
    B, V, C, W, H = img.shape
    avg, wxh = toy_backbone(img.reshape(B * V, C, W, H), backbone_params)
    avg = avg.reshape(B, V, -1)
    wxh = wxh.reshape(B, V, wxh.shape[-3], wxh.shape[-2], wxh.shape[-1])
    msk = pos == -1
    msk_wxh = msk.reshape(B, V, 1, 1, 1).astype(jnp.float32)
    msk_avg = msk.reshape(B, V, 1).astype(jnp.float32)
    wxh = msk_wxh * -1 + (1 - msk_wxh) * wxh
    avg = msk_avg * -1 + (1 - msk_avg) * avg
    return avg.max(axis=1), wxh.max(axis=1)


if __name__ == "__main__":
    B, V, C, W, H, F = 2, 4, 4, 16, 16, 32
    key = jax.random.PRNGKey(0)
    k_img, k_g, k_b, k_w = jax.random.split(key, 4)

    img = jax.random.normal(k_img, (B, V, C, W, H), jnp.float32)
    # -1 marks absent views (masked); other entries are ordinary positions.
    pos = jnp.array([[0, 1, -1, 2],
                     [-1, -1, 3, 0]], jnp.int32)
    backbone_params = {
        "gamma": 1.0 + 0.1 * jax.random.normal(k_g, (C,), jnp.float32),
        "beta": 0.1 * jax.random.normal(k_b, (C,), jnp.float32),
        "w_fc": 0.5 * jax.random.normal(k_w, (C, F), jnp.float32),
        "b_fc": jnp.zeros((F,), jnp.float32),
    }

    avg_features, wxh_features = mvcnn_forward(img, pos, backbone_params)
    jax.block_until_ready((avg_features, wxh_features))

    ref_avg, ref_wxh = _reference(img, pos, backbone_params)
    assert avg_features.shape == (B, F)
    assert wxh_features.shape == (B, C, W // 2, H // 2)
    assert jnp.allclose(avg_features, ref_avg, atol=1e-5, rtol=1e-5)
    assert jnp.allclose(wxh_features, ref_wxh, atol=1e-5, rtol=1e-5)

    print("KERNEL_OK")
</pallas_src>

<mosaic_0001>
module attributes {stable_mosaic.version = 11 : i64} {
  func.func @_mvcnn_view_pool_kernel(%arg0: i32, %arg1: memref<1x4x1xi32, #tpu.memory_space<vmem>>, %arg2: memref<1x4x32xf32, #tpu.memory_space<vmem>>, %arg3: memref<1x4x256xf32, #tpu.memory_space<vmem>>, %arg4: memref<1x1x32xf32, #tpu.memory_space<vmem>>, %arg5: memref<1x1x256xf32, #tpu.memory_space<vmem>>) attributes {dimension_semantics = [#tpu.dimension_semantics<parallel>], iteration_bounds = array<i64: 2>, scalar_prefetch = 0 : i64, scratch_operands = 0 : i64, tpu.core_type = #tpu.core_type<tc>, window_params = [{transform_indices = @transform_0, window_bounds = array<i64: 1, 4, 1>}, {transform_indices = @transform_1, window_bounds = array<i64: 1, 4, 32>}, {transform_indices = @transform_2, window_bounds = array<i64: 1, 4, 256>}, {transform_indices = @transform_3, window_bounds = array<i64: 1, 1, 32>}, {transform_indices = @transform_4, window_bounds = array<i64: 1, 1, 256>}]} {
    %c0 = arith.constant 0 : index
    %c0_0 = arith.constant 0 : index
    %c0_1 = arith.constant 0 : index
    %0 = vector.load %arg1[%c0, %c0_0, %c0_1] : memref<1x4x1xi32, #tpu.memory_space<vmem>>, vector<1x4x1xi32>
    %c-1_i32 = arith.constant -1 : i32
    %1 = vector.broadcast %c-1_i32 : i32 to vector<1x4x1xi32>
    %2 = arith.cmpi eq, %0, %1 : vector<1x4x1xi32>
    %c0_2 = arith.constant 0 : index
    %c0_3 = arith.constant 0 : index
    %c0_4 = arith.constant 0 : index
    %3 = vector.load %arg2[%c0_2, %c0_3, %c0_4] : memref<1x4x32xf32, #tpu.memory_space<vmem>>, vector<1x4x32xf32>
    %cst = arith.constant -1.000000e+00 : f32
    %4 = vector.shape_cast %2 : vector<1x4x1xi1> to vector<1x4x1xi1>
    %5 = vector.broadcast %4 : vector<1x4x1xi1> to vector<1x4x32xi1>
    %6 = vector.broadcast %cst : f32 to vector<1x4x32xf32>
    %7 = arith.select %5, %6, %3 : vector<1x4x32xi1>, vector<1x4x32xf32>
    %cst_5 = arith.constant dense<0xFF800000> : vector<1x32xf32>
    %8 = vector.multi_reduction <maximumf>, %7, %cst_5 [1] : vector<1x4x32xf32> to vector<1x32xf32>
    %9 = vector.shape_cast %8 : vector<1x32xf32> to vector<1x1x32xf32>
    %c0_6 = arith.constant 0 : index
    %c0_7 = arith.constant 0 : index
    %c0_8 = arith.constant 0 : index
    %10 = vector.load %arg4[%c0_6, %c0_7, %c0_8] : memref<1x1x32xf32, #tpu.memory_space<vmem>>, vector<1x1x32xf32>
    tpu.vector_store %arg4[%c0_6, %c0_7, %c0_8], %9 {strides = array<i32>} : memref<1x1x32xf32, #tpu.memory_space<vmem>>, vector<1x1x32xf32>,
    %c0_9 = arith.constant 0 : index
    %c0_10 = arith.constant 0 : index
    %c0_11 = arith.constant 0 : index
    %11 = vector.load %arg3[%c0_9, %c0_10, %c0_11] : memref<1x4x256xf32, #tpu.memory_space<vmem>>, vector<1x4x256xf32>
    %cst_12 = arith.constant -1.000000e+00 : f32
    %12 = vector.shape_cast %2 : vector<1x4x1xi1> to vector<1x4x1xi1>
    %13 = vector.broadcast %12 : vector<1x4x1xi1> to vector<1x4x256xi1>
    %14 = vector.broadcast %cst_12 : f32 to vector<1x4x256xf32>
    %15 = arith.select %13, %14, %11 : vector<1x4x256xi1>, vector<1x4x256xf32>
    %cst_13 = arith.constant dense<0xFF800000> : vector<1x256xf32>
    %16 = vector.multi_reduction <maximumf>, %15, %cst_13 [1] : vector<1x4x256xf32> to vector<1x256xf32>
    %17 = vector.shape_cast %16 : vector<1x256xf32> to vector<1x1x256xf32>
    %c0_14 = arith.constant 0 : index
    %c0_15 = arith.constant 0 : index
    %c0_16 = arith.constant 0 : index
    %18 = vector.load %arg5[%c0_14, %c0_15, %c0_16] : memref<1x1x256xf32, #tpu.memory_space<vmem>>, vector<1x1x256xf32>
    tpu.vector_store %arg5[%c0_14, %c0_15, %c0_16], %17 {strides = array<i32>} : memref<1x1x256xf32, #tpu.memory_space<vmem>>, vector<1x1x256xf32>,
    return
  }
  func.func @transform_0(%arg0: i32) -> (i32, i32, i32) {
    %c0_i32 = arith.constant 0 : i32
    %c0_i32_0 = arith.constant 0 : i32
    %c0_i32_1 = arith.constant 0 : i32
    return %arg0, %c0_i32, %c0_i32_0 : i32, i32, i32
  }
  func.func @transform_1(%arg0: i32) -> (i32, i32, i32) {
    %c0_i32 = arith.constant 0 : i32
    %c0_i32_0 = arith.constant 0 : i32
    %c0_i32_1 = arith.constant 0 : i32
    return %arg0, %c0_i32, %c0_i32_0 : i32, i32, i32
  }
  func.func @transform_2(%arg0: i32) -> (i32, i32, i32) {
    %c0_i32 = arith.constant 0 : i32
    %c0_i32_0 = arith.constant 0 : i32
    %c0_i32_1 = arith.constant 0 : i32
    return %arg0, %c0_i32, %c0_i32_0 : i32, i32, i32
  }
  func.func @transform_3(%arg0: i32) -> (i32, i32, i32) {
    %c0_i32 = arith.constant 0 : i32
    %c0_i32_0 = arith.constant 0 : i32
    %c0_i32_1 = arith.constant 0 : i32
    return %arg0, %c0_i32, %c0_i32_0 : i32, i32, i32
  }
  func.func @transform_4(%arg0: i32) -> (i32, i32, i32) {
    %c0_i32 = arith.constant 0 : i32
    %c0_i32_0 = arith.constant 0 : i32
    %c0_i32_1 = arith.constant 0 : i32
    return %arg0, %c0_i32, %c0_i32_0 : i32, i32, i32
  }
}

</mosaic_0001>

<bundles_post_ra>
// kernel: mvcnn_forward.1
= control target key start
LH: loop header
LB: loop body
LE: loop exit
PB: predicated region body
PF: predicated region fallthrough
CT: control target
= control target key end

     0   :  { %10 = vsyncpa [#allocation3], 0  ;;  %s690_s0 = inlined_call_operand.vmem [shape: s32[2,4,1], index: 0, kind: input, shape index: {}]   ;;  %s691_s1 = inlined_call_operand.vmem [shape: f32[2,4,32], index: 1, kind: input, shape index: {}]   ;;  %s692_s2 = inlined_call_operand.vmem [shape: f32[2,4,256], index: 2, kind: input, shape index: {}]   ;;  %s693_s3 = inlined_call_operand.hbm [shape: f32[2,1,32], index: 3, kind: output, shape index: {0}]   ;;  %s694_s4 = inlined_call_operand.vmem [shape: f32[2,1,256], index: 4, kind: output, shape index: {1}]  }
   0x1   :  { %12 = vsyncpa [#allocation3 + $0x1], 0  ;;  %s574_s15 = smov 0   ;;  %s576_s16 = smov 0  }
   0x2   :  { %s578_s17 = smov 0   ;;  %s580_s18 = smov 0  }
   0x3 LB: > { %s595_s19 = sadd.s32 4294967295, %s544_s18   ;;  %s426_s20 = sadd.s32 4294967294, %s544_s18   ;;  %s544_s18 = sphi %s580_s18, %s700_s18   ;;  %s540_s17 = sphi %s578_s17, %s699_s17   ;;  %s536_s16 = sphi %s576_s16, %s698_s16   ;;  %s532_s15 = sphi %s574_s15, %s697_s15  }
   0x4   : > { %s599_s21 = sadd.s32 1, %s544_s18   ;;  %s103_s22 = sadd.s32 1, %s540_s17 }
   0x5   : > { %s100_s23 = ssub.s32 %s544_s18, %s599_s21  ;;  %p113_p0 = scmp.ne.s32.totalorder %s540_s17, %s536_s16 }
   0x6   : > { %p101_p1 = scmp.eq.s32.totalorder %s100_s23, 0  ;;  %p114_p2 = scmp.eq.s32.totalorder %s595_s19, 1 }
   0x7   : > { %p119_p3 = scmp.ne.s32.totalorder %s536_s16, %s532_s15  ;;  %p120_p4 = scmp.eq.s32.totalorder %s426_s20, 1 }
   0x8   : > { %s610_s24 = scalar_select %p101_p1, %s540_s17, %s103_s22  }
   0x9   : > { %p612_p5 = por %p114_p2, %p113_p0  ;;  %p616_p6 = por %p120_p4, %p119_p3 }
   0xa   : > { %p429_p7 = scmp.ge.s32.totalorder %s544_s18, 1  ;;  %p186_p8 = scmp.lt.s32.totalorder %s544_s18, 3 }
   0xc   : > { %p187_p9 = pnand %p429_p7, %p186_p8 }
   0xd   : > { %p223_p10 = scmp.lt.s32.totalorder (!%p187_p9), %s595_s19, 1  ;;  %v546_v0 = vmov (!%p187_p9), 0   ;;  %vm249_vm1 = vcmask (!%p187_p9), 257024   ;;  %vm265_vm2 = vcmask (!%p187_p9), 1043456   ;;  %v547_v16 = vmov (!%p187_p9), 1966171168  }
   0xe   : > { %190 = sbr.rel (%p187_p9) target bundleno = 189 (0xbd), region = 32  ;;  %480 = vset.pattern.permute.xlu0 (!%p187_p9), %v546_v0  ;;  %v284_v17 = vunpack.c.l.s4 (!%p187_p9), %v547_v16  ;;  %v286_v18 = vlaneseq (!%p187_p9)  ;;  %s215_s13 = sand.u32 (!%p187_p9), 1, %s536_s16   ;;  %vm257_vm4 = vcmask (!%p187_p9), 253952  }
   0xf   : > { %s435_s14 = sshll.u32 (!%p187_p9), %s595_s19, 4  ;;  %s216_s20 = scalar_lea.vmem (!%p187_p9), [#allocation2], %s215_s13 }
  0x10   : > { %v285_v25 = vunpack.c.0.s8 (!%p187_p9), %v284_v17  ;;  %v287_v26 = vshrl.u32 (!%p187_p9), %v286_v18, 7  ;;  %s320_s22 = sshll.u32 (!%p187_p9), %s216_s20, 4  ;;  %s642_s29 = scalar_lea.hbm (!%p187_p9), %s693_s3, %s435_s14  ;;  %s644_s22 = int_to_ptr.vmem [resolvable:$true] %s320_s22 }
  0x11   : > { %s304_s30 = scalar_lea.sflag (!%p187_p9), [#allocation3], %s215_s13 }
  0x12   : > { %v288_v33 = vsub.s32 (!%p187_p9), %v285_v25, %v287_v26 }
  0x15   : > { %s624_s27 = scalar_select %p223_p10, %s595_s19, 1 }
  0x17   : > { %s430_s28 = sshll.u32 %s624_s27, 2  ;;  %s438_s6 = sshll.u32 %s624_s27, 3 }
  0x18   : > { %s226_s5 = scalar_lea.vmem %s690_s0, %s430_s28  ;;  %s235_s9 = scalar_lea.vmem %s692_s2, %s438_s6 }
  0x19   : > { %v240_v1 = vld [vmem:[%s226_s5] sm:$0xf]  ;;  %s230_s12 = scalar_lea.vmem %s691_s1, %s430_s28  ;;  %s434_s19 = sshll.u32 %s624_s27, 1 }
  0x1a   : > { %vm241_vm0 = vcmp.eq.s32.totalorder %v240_v1, 4294967295  ;;  %v259_v3 = vld [vmem:[%s235_s9] sm:$0xff]  ;;  %s482_s5 = scalar_lea.vmem %s644_s22, 16  ;;  %s548_s6 = smov [#allocation2]  }
  0x1b   : > { %v243_v2 = vsel %vm241_vm0, 1, %v546_v0  ;;  %v261_v4 = vcombine.high %v259_v3, %v259_v3  ;;  %v242_v5 = vld [vmem:[%s230_s12] sm:$0xf]  ;;  %p483_p11 = scmp.ne.s32.totalorder %s644_s22, %s482_s5  ;;  %s486_s7 = sshll.u32 %s548_s6, 4  ;;  %s487_s7 = int_to_ptr.vmem [resolvable:$false] %s486_s7 }
  0x1c   : > { %245 = vperm.xlu0 %480, %v243_v2   ;;  %s488_s8 = scalar_lea.vmem %s487_s7, 32  ;;  %p489_p0 = scmp.lt.s32.totalorder %s644_s22, %s487_s7 }
  0x1d   : > { %p484_p12 = pnand %p483_p11, %p612_p5  ;;  %p490_p1 = scmp.lt.s32.totalorder %s488_s8, %s482_s5 }
  0x1f   : > { %p485_p13 = pneg %p484_p12  ;;  %p491_p2 = por %p490_p1, %p489_p0 }
  0x21   : > { %p492_p3 = pnand %p491_p2, %p485_p13 }
  0x9b   : > { %v246_v6 = vpop.permute.xlu0 %245 }
  0x9c   : > { %vm247_vm3 = vcmp.eq.s32.totalorder %v246_v6, 1 }
  0x9d   : > { %v248_v7 = vsel %vm247_vm3, -1.0, %v242_v5  ;;  %v263_v8 = vsel %vm247_vm3, -1.0, %v259_v3  ;;  %v264_v9 = vsel %vm247_vm3, -1.0, %v261_v4 }
  0x9e   : > { %v250_v10 = vsel %vm249_vm1, %v248_v7, -inf  ;;  %v266_v11 = vsel %vm265_vm2, %v263_v8, -inf  ;;  %v273_v12 = vsel %vm265_vm2, %v264_v9, -inf }
  0x9f   : > { %v251_v13 = vrot.slane %v250_v10, 4  ;;  %v267_v14 = vrot.slane %v266_v11, 4  ;;  %v274_v15 = vrot.slane %v273_v12, 4 }
  0xa1   : > { %v252_v19 = vmax.f32 %v250_v10, %v251_v13  ;;  %v268_v20 = vmax.f32 %v266_v11, %v267_v14  ;;  %v275_v21 = vmax.f32 %v273_v12, %v274_v15 }
  0xa3   : > { %v253_v22 = vrot.slane %v252_v19, 2  ;;  %v269_v23 = vrot.slane %v268_v20, 2  ;;  %v276_v24 = vrot.slane %v275_v21, 2 }
  0xa5   : > { %v254_v27 = vmax.f32 %v252_v19, %v253_v22  ;;  %v270_v28 = vmax.f32 %v268_v20, %v269_v23  ;;  %v277_v29 = vmax.f32 %v275_v21, %v276_v24 }
  0xa7   : > { %v255_v30 = vrot.slane %v254_v27, 1  ;;  %v271_v31 = vrot.slane %v270_v28, 1  ;;  %v278_v32 = vrot.slane %v277_v29, 1 }
  0xa9   : > { %v272_v34 = vmax.f32 %v270_v28, %v271_v31  ;;  %v279_v35 = vmax.f32 %v277_v29, %v278_v32  ;;  %v256_v36 = vmax.f32 %v254_v27, %v255_v30 }
  0xab   : > { %v282_v37 = vcombine.low %v272_v34, %v279_v35  ;;  %258 = vst.msk [vmem:[%s216_s20] sm:$0x1] %vm257_vm4, %v256_v36 }
  0xac   : > { %495 = shalt.err (!%p492_p3)
}
  0xad   : > { %s496_s9 = scalar_lea.hbm %s642_s29, 16  ;;  %s500_s12 = scalar_lea.hbm %s693_s3, 32 }
  0xae   : > { %p497_p4 = scmp.ne.s32.totalorder %s642_s29, %s496_s9  ;;  %p501_p9 = scmp.lt.u32.totalorder %s642_s29, %s693_s3 }
  0xaf   : > { %p502_p10 = scmp.lt.u32.totalorder %s500_s12, %s496_s9  ;;  %p504_p12 = scmp.lt.u32.totalorder %s496_s9, %s642_s29 }
  0xb0   : > { %p498_p7 = pnand %p497_p4, %p612_p5 }
  0xb1   : > { %p503_p11 = por %p502_p10, %p501_p9 }
  0xb2   : > { %p499_p8 = pneg %p498_p7 }
  0xb3   : > { %p505_p13 = por %p504_p12, %p503_p11 }
  0xb5   : > { %p506_p0 = pnand %p505_p13, %p499_p8 }
  0xb7   : > { %509 = shalt.err (!%p506_p0)
}
  0xb8   : > { %439 = dma.vmem_to_hbm [thread:$0]  (%p612_p5), %s644_s22, 16, %s642_s29, %s304_s30   ;;  %v289_v38 = vrot.slane %v282_v37, %v288_v33  ;;  %vm300_vm5 = vcmp.lt.s32.totalorder %v286_v18, 256 }
  0xb9   : > { %s239_s28 = scalar_lea.vmem %s694_s4, %s434_s19 }
  0xba   : > { %v296_v39 = vrot.slane %v289_v38, %v288_v33 }
  0xbc   : > { %302 = vst.msk [vmem:[%s239_s28] sm:$0x3] %vm300_vm5, %v296_v39 }
  0xbd PF: > { %p445_p1 = scmp.ge.s32.totalorder %s544_s18, 2  ;;  %s335_s5 = sand.u32 1, %s532_s15  }
  0xbe   : > { %s336_s25 = scalar_lea.sflag [#allocation3], %s335_s5 }
  0xbf   : > { %p442_p2 = pnand %p445_p1, %p616_p6 }
  0xc1   : > { %527 = dma.done.wait (!%p442_p2), %s336_s25, 16  }
  0xc2   : > { %529 = vsyncadd (!%p442_p2), %s336_s25, 4294967280  ;;  %p15_p5 = scmp.ge.s32.totalorder %s599_s21, 4   ;;  %s697_s15 = smov %s536_s16 }
  0xc3   : > { %s698_s16 = smov %s540_s17  ;;  %s699_s17 = smov %s610_s24 }
  0xc4   : > { %s700_s18 = smov %s599_s21  ;;  %17 = sbr.rel (!%p15_p5) target bundleno = 3 (0x3), region = 85 }
  0xcb   :  { %347 = vsyncpa [#allocation3], 1 }
  0xcc   :  { %349 = vsyncpa [#allocation3 + $0x1], 1 }

</bundles_post_ra>
